<compile_context>
chip_gen: v7x
topology: tpu7x:2x2x1
jax: 0.10.0
libtpu: 0.0.40
codegen_flags: <defaults>
</compile_context>

<pallas_src>
import functools

import jax
import jax.numpy as jnp
from jax.experimental import pallas as pl
from jax.experimental.pallas import tpu as pltpu


_TARGET_STEPS = 8        # >= 4 grid steps per TensorCore on dual-TC chips
_ROW_UNROLL_CAP = 256    # max h for the per-row flattened general path
_HEADROOM = 4 << 20      # compiler-internal scratch headroom (bytes)


def _ru(x, m):
    return (x + m - 1) // m * m


def _cdiv(a, b):
    return (a + b - 1) // b


# --------------------------------------------------------------------------- #
# Kernels
# --------------------------------------------------------------------------- #
def _flat_kernel(x_ref, o_ref, *, body):
    """pad_w == 0: padded plane is [h*w body | pad_h*w zeros], contiguous in lanes."""
    cblk = o_ref.shape[0]
    tail = o_ref.shape[2] - body
    o_ref[:, :, :body] = x_ref[...]
    o_ref[:, :, body:] = jnp.zeros((cblk, 1, tail), o_ref.dtype)


def _flat_general_kernel(x_ref, o_ref, *, h, w, wp):
    """pad_w > 0, narrow wp: lane-dense flattened output.

    Zero the whole lane-dense block once, then overwrite the h body rows at
    static offsets r*wp.  The extra VMEM zero-stores are cheap in an HBM-bound
    kernel; the win is one contiguous HBM writeback per block.
    """
    o_ref[...] = jnp.zeros(o_ref.shape, o_ref.dtype)
    for r in range(h):  # static unroll; bounded by _ROW_UNROLL_CAP
        o_ref[:, :, r * wp: r * wp + w] = x_ref[:, :, r * w: r * w + w]


def _hw_kernel(x_ref, o_ref, *, h, w, pad_h, pad_w):
    """3-D path for wide planes: block (cblk, h, w) -> (cblk, hp, wp)."""
    cblk = o_ref.shape[0]
    o_ref[:, :h, :w] = x_ref[...]
    if pad_w:
        o_ref[:, :h, w:] = jnp.zeros((cblk, h, pad_w), o_ref.dtype)
    if pad_h:
        o_ref[:, h:, :] = jnp.zeros((cblk, pad_h, w + pad_w), o_ref.dtype)


def _htile_kernel(x_ref, o_ref, *, th, w, pad_w, n_body_tiles):
    """H-tiled path for planes too large for VMEM: block (1, th, w) -> (1, th, wp)."""
    t = pl.program_id(1)

    @pl.when(t < n_body_tiles)
    def _():
        o_ref[:, :, :w] = x_ref[...]
        if pad_w:
            o_ref[:, :, w:] = jnp.zeros((1, th, pad_w), o_ref.dtype)

    @pl.when(t >= n_body_tiles)
    def _():
        o_ref[...] = jnp.zeros(o_ref.shape, o_ref.dtype)


# --------------------------------------------------------------------------- #
# Wrapper
# --------------------------------------------------------------------------- #
def _vmem_capacity_bytes():
    try:
        cap = int(pltpu.get_tpu_info().vmem_capacity_bytes)
        if 16 << 20 <= cap <= 256 << 20:
            return cap
    except Exception:
        pass
    return 64 << 20  # conservative default: v7x per-TensorCore VMEM


def _vmem_limit_bytes(block_pair_bytes, ceiling):
    # 2x for double-buffering, 2x margin for compiler scratch / layout rounding.
    want = 4 * block_pair_bytes + _HEADROOM
    return int(min(ceiling, max(want, 16 << 20)))


def padder_forward(x: jax.Array, size: int, *,
                   _force_path=None, _force_pair_budget=None) -> jax.Array:
    """Pad NCHW `x` so H and W become multiples of `size` (bottom/right zeros)."""
    n, c, h, w = x.shape
    pad_h = (-h) % size
    pad_w = (-w) % size
    if pad_h == 0 and pad_w == 0:
        # Aligned: identity (matches VITMSTPP's nn.Identity), no HBM round trip.
        return x

    hp, wp = h + pad_h, w + pad_w
    nc = n * c
    isz = jnp.dtype(x.dtype).itemsize
    sub = {4: 8, 2: 16, 1: 32}.get(isz, 8)   # sublane tile for this dtype

    vmem_cap = _vmem_capacity_bytes()
    ceiling = int(vmem_cap * 0.9)
    # One (input block + output block) pair; x2 double-buffered ~= 40% of physical.
    pair_budget = _force_pair_budget if _force_pair_budget else max(vmem_cap // 5, 1 << 20)

    # ---------------- path selection ---------------- #
    path = _force_path
    if path is None:
        if wp < 128 and (pad_w == 0 or h <= _ROW_UNROLL_CAP):
            lin = h * w
            lout = hp * wp
            plane_flat = sub * (_ru(lin, 128) + _ru(lout, 128)) * isz
            if 2 * plane_flat + _HEADROOM <= ceiling:
                path = "flat" if pad_w == 0 else "flat_general"
        if path is None:
            plane_pair = (_ru(h, sub) * _ru(w, 128) + _ru(hp, sub) * _ru(wp, 128)) * isz
            path = "hw3d" if 2 * plane_pair + _HEADROOM <= ceiling else "htile"

    # ---------------- flattened, lane-dense paths (narrow planes) ---------------- #
    if path in ("flat", "flat_general"):
        lin = h * w
        lout = hp * wp                      # == hp * w when pad_w == 0
        # Each (1, L) slab occupies a full sublane-tile row in VMEM.
        plane_flat = sub * (_ru(lin, 128) + _ru(lout, 128)) * isz
        cblk = min(nc, max(1, pair_budget // plane_flat),
                   max(1, _cdiv(nc, _TARGET_STEPS)))
        steps = _cdiv(nc, cblk)
        if steps > 1 and steps % 2 == 1 and cblk > 1:
            cblk = _cdiv(nc, steps + 1)     # nudge toward an even step count
        block_pair = cblk * plane_flat

        if path == "flat":
            kernel = functools.partial(_flat_kernel, body=lin)
        else:
            kernel = functools.partial(_flat_general_kernel, h=h, w=w, wp=wp)

        out = pl.pallas_call(
            kernel,
            out_shape=jax.ShapeDtypeStruct((nc, 1, lout), x.dtype),
            grid=(_cdiv(nc, cblk),),
            in_specs=[pl.BlockSpec((cblk, 1, lin), lambda i: (i, 0, 0))],
            out_specs=pl.BlockSpec((cblk, 1, lout), lambda i: (i, 0, 0)),
            compiler_params=pltpu.CompilerParams(
                dimension_semantics=("parallel",),
                vmem_limit_bytes=_vmem_limit_bytes(block_pair, ceiling),
            ),
        )(x.reshape(nc, 1, lin))
        return out.reshape(n, c, hp, wp)

    # ---------------- 3-D plane path (wide planes that fit VMEM) ---------------- #
    if path == "hw3d":
        plane_pair = (_ru(h, sub) * _ru(w, 128) + _ru(hp, sub) * _ru(wp, 128)) * isz
        cblk = min(nc, max(1, pair_budget // plane_pair),
                   max(1, _cdiv(nc, _TARGET_STEPS)))
        steps = _cdiv(nc, cblk)
        if steps > 1 and steps % 2 == 1 and cblk > 1:
            cblk = _cdiv(nc, steps + 1)
        out = pl.pallas_call(
            functools.partial(_hw_kernel, h=h, w=w, pad_h=pad_h, pad_w=pad_w),
            out_shape=jax.ShapeDtypeStruct((nc, hp, wp), x.dtype),
            grid=(_cdiv(nc, cblk),),
            in_specs=[pl.BlockSpec((cblk, h, w), lambda i: (i, 0, 0))],
            out_specs=pl.BlockSpec((cblk, hp, wp), lambda i: (i, 0, 0)),
            compiler_params=pltpu.CompilerParams(
                dimension_semantics=("parallel",),
                vmem_limit_bytes=_vmem_limit_bytes(cblk * plane_pair, ceiling),
            ),
        )(x.reshape(nc, h, w))
        return out.reshape(n, c, hp, wp)

    # ---------------- H-tiled path for planes too large for VMEM ---------------- #
    if path == "htile":
        row_pair = (_ru(w, 128) + _ru(wp, 128)) * isz
        max_th = max(sub, (pair_budget // max(row_pair, 1)) // sub * sub)
        th = 0
        cand = (min(h, max_th) // sub) * sub
        while cand >= sub:               # largest multiple of `sub` dividing h
            if h % cand == 0:
                th = cand
                break
            cand -= sub
        if th and 2 * th * row_pair + _HEADROOM <= ceiling:
            n_body = h // th
            n_tiles = n_body + _cdiv(pad_h, th)
            out = pl.pallas_call(
                functools.partial(_htile_kernel, th=th, w=w, pad_w=pad_w,
                                  n_body_tiles=n_body),
                out_shape=jax.ShapeDtypeStruct((nc, hp, wp), x.dtype),
                grid=(nc, n_tiles),
                in_specs=[pl.BlockSpec(
                    (1, th, w),
                    # Pad tiles never read their input; clamp to a valid body tile.
                    lambda ci, t: (ci, jnp.minimum(t, n_body - 1), 0))],
                out_specs=pl.BlockSpec((1, th, wp), lambda ci, t: (ci, t, 0)),
                compiler_params=pltpu.CompilerParams(
                    dimension_semantics=("parallel", "parallel"),
                    vmem_limit_bytes=_vmem_limit_bytes(th * row_pair, ceiling),
                ),
            )(x.reshape(nc, h, w))
            return out.reshape(n, c, hp, wp)
        # TODO(synk): no legal H tile (h not a multiple of the sublane tile, or a
        # single row pair exceeds VMEM); fall back to XLA pad rather than failing.

    # ---------------- last-resort XLA fallback ---------------- #
    return jnp.pad(x, ((0, 0), (0, 0), (0, pad_h), (0, pad_w)))


if __name__ == "__main__":
    key = jax.random.PRNGKey(0)
    k1, k2, k3, k4, k5 = jax.random.split(key, 5)
    SIZE = 8

    def ref_pad(a, size):
        ph, pw = (-a.shape[2]) % size, (-a.shape[3]) % size
        return jnp.pad(a, ((0, 0), (0, 0), (0, ph), (0, pw)))

    # 1) Lane-dense flattened general path: pad both H and W (13 -> 16, wp < 128).
    x1 = jax.random.normal(k1, (2, 4, 13, 13), dtype=jnp.float32)
    o1 = jax.block_until_ready(padder_forward(x1, SIZE))
    assert o1.shape == (2, 4, 16, 16) and o1.dtype == x1.dtype
    assert jnp.array_equal(o1, ref_pad(x1, SIZE)), "flat_general path mismatch"

    # 2) Flat path: W already aligned, only H padded (contiguous body + zero tail).
    x2 = jax.random.normal(k2, (2, 4, 13, 16), dtype=jnp.float32)
    o2 = jax.block_until_ready(padder_forward(x2, SIZE))
    assert o2.shape == (2, 4, 16, 16)
    assert jnp.array_equal(o2, ref_pad(x2, SIZE)), "flat path mismatch"

    # 3) Wide-plane 3-D path: wp >= 128 (250 -> 256), pad both dims.
    x3 = jax.random.normal(k3, (2, 4, 13, 250), dtype=jnp.float32)
    o3 = jax.block_until_ready(padder_forward(x3, SIZE))
    assert o3.shape == (2, 4, 16, 256)
    assert jnp.array_equal(o3, ref_pad(x3, SIZE)), "hw3d path mismatch"

    # 4) H-tiled large-plane path (forced small budget so TH < h is exercised).
    x4 = jax.random.normal(k4, (1, 2, 64, 100), dtype=jnp.float32)
    o4 = jax.block_until_ready(
        padder_forward(x4, 48, _force_path="htile", _force_pair_budget=32 * 1024))
    assert o4.shape == (1, 2, 96, 144)
    assert jnp.array_equal(o4, ref_pad(x4, 48)), "htile path mismatch"

    # 5) Fast path: already aligned -> identity.
    x5 = jax.random.normal(k5, (2, 4, 16, 16), dtype=jnp.float32)
    o5 = jax.block_until_ready(padder_forward(x5, SIZE))
    assert o5.shape == x5.shape and jnp.array_equal(o5, x5), "fast path mismatch"

    print("KERNEL_OK")
</pallas_src>

<mosaic_0001>
module attributes {stable_mosaic.version = 11 : i64} {
  func.func @_flat_general_kernel(%arg0: i32, %arg1: memref<1x1x169xf32, #tpu.memory_space<vmem>>, %arg2: memref<1x1x256xf32, #tpu.memory_space<vmem>>) attributes {dimension_semantics = [#tpu.dimension_semantics<parallel>], iteration_bounds = array<i64: 8>, scalar_prefetch = 0 : i64, scratch_operands = 0 : i64, tpu.core_type = #tpu.core_type<tc>, window_params = [{transform_indices = @transform_0, window_bounds = array<i64: 1, 1, 169>}, {transform_indices = @transform_1, window_bounds = array<i64: 1, 1, 256>}]} {
    %cst = arith.constant 0.000000e+00 : f32
    %0 = vector.broadcast %cst : f32 to vector<1x1x256xf32>
    %c0 = arith.constant 0 : index
    %c0_0 = arith.constant 0 : index
    %c0_1 = arith.constant 0 : index
    %1 = vector.load %arg2[%c0, %c0_0, %c0_1] : memref<1x1x256xf32, #tpu.memory_space<vmem>>, vector<1x1x256xf32>
    tpu.vector_store %arg2[%c0, %c0_0, %c0_1], %0 {strides = array<i32>} : memref<1x1x256xf32, #tpu.memory_space<vmem>>, vector<1x1x256xf32>,
    %c0_2 = arith.constant 0 : index
    %c0_3 = arith.constant 0 : index
    %c0_4 = arith.constant 0 : index
    %2 = vector.load %arg1[%c0_2, %c0_3, %c0_4] : memref<1x1x169xf32, #tpu.memory_space<vmem>>, vector<1x1x13xf32>
    %c0_5 = arith.constant 0 : index
    %c0_6 = arith.constant 0 : index
    %c0_7 = arith.constant 0 : index
    %3 = vector.load %arg2[%c0_5, %c0_6, %c0_7] : memref<1x1x256xf32, #tpu.memory_space<vmem>>, vector<1x1x13xf32>
    tpu.vector_store %arg2[%c0_5, %c0_6, %c0_7], %2 {strides = array<i32>} : memref<1x1x256xf32, #tpu.memory_space<vmem>>, vector<1x1x13xf32>,
    %c0_8 = arith.constant 0 : index
    %c0_9 = arith.constant 0 : index
    %c13 = arith.constant 13 : index
    %4 = vector.load %arg1[%c0_8, %c0_9, %c13] : memref<1x1x169xf32, #tpu.memory_space<vmem>>, vector<1x1x13xf32>
    %c0_10 = arith.constant 0 : index
    %c0_11 = arith.constant 0 : index
    %c16 = arith.constant 16 : index
    %5 = vector.load %arg2[%c0_10, %c0_11, %c16] : memref<1x1x256xf32, #tpu.memory_space<vmem>>, vector<1x1x13xf32>
    tpu.vector_store %arg2[%c0_10, %c0_11, %c16], %4 {strides = array<i32>} : memref<1x1x256xf32, #tpu.memory_space<vmem>>, vector<1x1x13xf32>,
    %c0_12 = arith.constant 0 : index
    %c0_13 = arith.constant 0 : index
    %c26 = arith.constant 26 : index
    %6 = vector.load %arg1[%c0_12, %c0_13, %c26] : memref<1x1x169xf32, #tpu.memory_space<vmem>>, vector<1x1x13xf32>
    %c0_14 = arith.constant 0 : index
    %c0_15 = arith.constant 0 : index
    %c32 = arith.constant 32 : index
    %7 = vector.load %arg2[%c0_14, %c0_15, %c32] : memref<1x1x256xf32, #tpu.memory_space<vmem>>, vector<1x1x13xf32>
    tpu.vector_store %arg2[%c0_14, %c0_15, %c32], %6 {strides = array<i32>} : memref<1x1x256xf32, #tpu.memory_space<vmem>>, vector<1x1x13xf32>,
    %c0_16 = arith.constant 0 : index
    %c0_17 = arith.constant 0 : index
    %c39 = arith.constant 39 : index
    %8 = vector.load %arg1[%c0_16, %c0_17, %c39] : memref<1x1x169xf32, #tpu.memory_space<vmem>>, vector<1x1x13xf32>
    %c0_18 = arith.constant 0 : index
    %c0_19 = arith.constant 0 : index
    %c48 = arith.constant 48 : index
    %9 = vector.load %arg2[%c0_18, %c0_19, %c48] : memref<1x1x256xf32, #tpu.memory_space<vmem>>, vector<1x1x13xf32>
    tpu.vector_store %arg2[%c0_18, %c0_19, %c48], %8 {strides = array<i32>} : memref<1x1x256xf32, #tpu.memory_space<vmem>>, vector<1x1x13xf32>,
    %c0_20 = arith.constant 0 : index
    %c0_21 = arith.constant 0 : index
    %c52 = arith.constant 52 : index
    %10 = vector.load %arg1[%c0_20, %c0_21, %c52] : memref<1x1x169xf32, #tpu.memory_space<vmem>>, vector<1x1x13xf32>
    %c0_22 = arith.constant 0 : index
    %c0_23 = arith.constant 0 : index
    %c64 = arith.constant 64 : index
    %11 = vector.load %arg2[%c0_22, %c0_23, %c64] : memref<1x1x256xf32, #tpu.memory_space<vmem>>, vector<1x1x13xf32>
    tpu.vector_store %arg2[%c0_22, %c0_23, %c64], %10 {strides = array<i32>} : memref<1x1x256xf32, #tpu.memory_space<vmem>>, vector<1x1x13xf32>,
    %c0_24 = arith.constant 0 : index
    %c0_25 = arith.constant 0 : index
    %c65 = arith.constant 65 : index
    %12 = vector.load %arg1[%c0_24, %c0_25, %c65] : memref<1x1x169xf32, #tpu.memory_space<vmem>>, vector<1x1x13xf32>
    %c0_26 = arith.constant 0 : index
    %c0_27 = arith.constant 0 : index
    %c80 = arith.constant 80 : index
    %13 = vector.load %arg2[%c0_26, %c0_27, %c80] : memref<1x1x256xf32, #tpu.memory_space<vmem>>, vector<1x1x13xf32>
    tpu.vector_store %arg2[%c0_26, %c0_27, %c80], %12 {strides = array<i32>} : memref<1x1x256xf32, #tpu.memory_space<vmem>>, vector<1x1x13xf32>,
    %c0_28 = arith.constant 0 : index
    %c0_29 = arith.constant 0 : index
    %c78 = arith.constant 78 : index
    %14 = vector.load %arg1[%c0_28, %c0_29, %c78] : memref<1x1x169xf32, #tpu.memory_space<vmem>>, vector<1x1x13xf32>
    %c0_30 = arith.constant 0 : index
    %c0_31 = arith.constant 0 : index
    %c96 = arith.constant 96 : index
    %15 = vector.load %arg2[%c0_30, %c0_31, %c96] : memref<1x1x256xf32, #tpu.memory_space<vmem>>, vector<1x1x13xf32>
    tpu.vector_store %arg2[%c0_30, %c0_31, %c96], %14 {strides = array<i32>} : memref<1x1x256xf32, #tpu.memory_space<vmem>>, vector<1x1x13xf32>,
    %c0_32 = arith.constant 0 : index
    %c0_33 = arith.constant 0 : index
    %c91 = arith.constant 91 : index
    %16 = vector.load %arg1[%c0_32, %c0_33, %c91] : memref<1x1x169xf32, #tpu.memory_space<vmem>>, vector<1x1x13xf32>
    %c0_34 = arith.constant 0 : index
    %c0_35 = arith.constant 0 : index
    %c112 = arith.constant 112 : index
    %17 = vector.load %arg2[%c0_34, %c0_35, %c112] : memref<1x1x256xf32, #tpu.memory_space<vmem>>, vector<1x1x13xf32>
    tpu.vector_store %arg2[%c0_34, %c0_35, %c112], %16 {strides = array<i32>} : memref<1x1x256xf32, #tpu.memory_space<vmem>>, vector<1x1x13xf32>,
    %c0_36 = arith.constant 0 : index
    %c0_37 = arith.constant 0 : index
    %c104 = arith.constant 104 : index
    %18 = vector.load %arg1[%c0_36, %c0_37, %c104] : memref<1x1x169xf32, #tpu.memory_space<vmem>>, vector<1x1x13xf32>
    %c0_38 = arith.constant 0 : index
    %c0_39 = arith.constant 0 : index
    %c128 = arith.constant 128 : index
    %19 = vector.load %arg2[%c0_38, %c0_39, %c128] : memref<1x1x256xf32, #tpu.memory_space<vmem>>, vector<1x1x13xf32>
    tpu.vector_store %arg2[%c0_38, %c0_39, %c128], %18 {strides = array<i32>} : memref<1x1x256xf32, #tpu.memory_space<vmem>>, vector<1x1x13xf32>,
    %c0_40 = arith.constant 0 : index
    %c0_41 = arith.constant 0 : index
    %c117 = arith.constant 117 : index
    %20 = vector.load %arg1[%c0_40, %c0_41, %c117] : memref<1x1x169xf32, #tpu.memory_space<vmem>>, vector<1x1x13xf32>
    %c0_42 = arith.constant 0 : index
    %c0_43 = arith.constant 0 : index
    %c144 = arith.constant 144 : index
    %21 = vector.load %arg2[%c0_42, %c0_43, %c144] : memref<1x1x256xf32, #tpu.memory_space<vmem>>, vector<1x1x13xf32>
    tpu.vector_store %arg2[%c0_42, %c0_43, %c144], %20 {strides = array<i32>} : memref<1x1x256xf32, #tpu.memory_space<vmem>>, vector<1x1x13xf32>,
    %c0_44 = arith.constant 0 : index
    %c0_45 = arith.constant 0 : index
    %c130 = arith.constant 130 : index
    %22 = vector.load %arg1[%c0_44, %c0_45, %c130] : memref<1x1x169xf32, #tpu.memory_space<vmem>>, vector<1x1x13xf32>
    %c0_46 = arith.constant 0 : index
    %c0_47 = arith.constant 0 : index
    %c160 = arith.constant 160 : index
    %23 = vector.load %arg2[%c0_46, %c0_47, %c160] : memref<1x1x256xf32, #tpu.memory_space<vmem>>, vector<1x1x13xf32>
    tpu.vector_store %arg2[%c0_46, %c0_47, %c160], %22 {strides = array<i32>} : memref<1x1x256xf32, #tpu.memory_space<vmem>>, vector<1x1x13xf32>,
    %c0_48 = arith.constant 0 : index
    %c0_49 = arith.constant 0 : index
    %c143 = arith.constant 143 : index
    %24 = vector.load %arg1[%c0_48, %c0_49, %c143] : memref<1x1x169xf32, #tpu.memory_space<vmem>>, vector<1x1x13xf32>
    %c0_50 = arith.constant 0 : index
    %c0_51 = arith.constant 0 : index
    %c176 = arith.constant 176 : index
    %25 = vector.load %arg2[%c0_50, %c0_51, %c176] : memref<1x1x256xf32, #tpu.memory_space<vmem>>, vector<1x1x13xf32>
    tpu.vector_store %arg2[%c0_50, %c0_51, %c176], %24 {strides = array<i32>} : memref<1x1x256xf32, #tpu.memory_space<vmem>>, vector<1x1x13xf32>,
    %c0_52 = arith.constant 0 : index
    %c0_53 = arith.constant 0 : index
    %c156 = arith.constant 156 : index
    %26 = vector.load %arg1[%c0_52, %c0_53, %c156] : memref<1x1x169xf32, #tpu.memory_space<vmem>>, vector<1x1x13xf32>
    %c0_54 = arith.constant 0 : index
    %c0_55 = arith.constant 0 : index
    %c192 = arith.constant 192 : index
    %27 = vector.load %arg2[%c0_54, %c0_55, %c192] : memref<1x1x256xf32, #tpu.memory_space<vmem>>, vector<1x1x13xf32>
    tpu.vector_store %arg2[%c0_54, %c0_55, %c192], %26 {strides = array<i32>} : memref<1x1x256xf32, #tpu.memory_space<vmem>>, vector<1x1x13xf32>,
    return
  }
  func.func @transform_0(%arg0: i32) -> (i32, i32, i32) {
    %c0_i32 = arith.constant 0 : i32
    %c0_i32_0 = arith.constant 0 : i32
    %c0_i32_1 = arith.constant 0 : i32
    return %arg0, %c0_i32, %c0_i32_0 : i32, i32, i32
  }
  func.func @transform_1(%arg0: i32) -> (i32, i32, i32) {
    %c0_i32 = arith.constant 0 : i32
    %c0_i32_0 = arith.constant 0 : i32
    %c0_i32_1 = arith.constant 0 : i32
    return %arg0, %c0_i32, %c0_i32_0 : i32, i32, i32
  }
}

</mosaic_0001>

<bundles_post_ra>
// kernel: tpu_custom_call.1
= control target key start
LH: loop header
LB: loop body
LE: loop exit
PB: predicated region body
PF: predicated region fallthrough
CT: control target
= control target key end

     0   :  { %6 = vsyncpa [#allocation3], 0  ;;  %s824_s0 = inlined_call_operand.hbm [shape: f32[8,1,169], index: 0, kind: input, shape index: {}]   ;;  %s825_s1 = inlined_call_operand.hbm [shape: f32[8,1,256], index: 1, kind: output, shape index: {}]  }
   0x1   :  { %8 = vsyncpa [#allocation3 + $0x1], 0 }
   0x2   :  { %9 = vsyncpa [#allocation4], 0 }
   0x3   :  { %11 = vsyncpa [#allocation4 + $0x1], 0  ;;  %s521_s6 = smov 0   ;;  %s523_s7 = smov 0  }
   0x4   :  { %s525_s8 = smov 0   ;;  %s527_s9 = smov 0  }
   0x5 LB: > { %s542_s10 = sadd.s32 4294967295, %s494_s9   ;;  %s323_s11 = sadd.s32 4294967294, %s494_s9   ;;  %s494_s9 = sphi %s527_s9, %s861_s9   ;;  %s490_s8 = sphi %s525_s8, %s860_s8   ;;  %s486_s7 = sphi %s523_s7, %s859_s7   ;;  %s482_s6 = sphi %s521_s6, %s858_s6  }
   0x6   : > { %s546_s12 = sadd.s32 1, %s494_s9   ;;  %s24_s13 = sadd.s32 1, %s490_s8 }
   0x7   : > { %s21_s14 = ssub.s32 %s494_s9, %s546_s12  ;;  %p31_p0 = scmp.ne.s32.totalorder %s490_s8, %s486_s7 }
   0x8   : > { %p22_p1 = scmp.eq.s32.totalorder %s21_s14, 0  ;;  %p32_p2 = scmp.eq.s32.totalorder %s494_s9, 0 }
   0x9   : > { %p37_p3 = scmp.ne.s32.totalorder %s486_s7, %s482_s6  ;;  %p38_p4 = scmp.eq.s32.totalorder %s542_s10, 0 }
   0xa   : > { %s558_s15 = scalar_select %p22_p1, %s490_s8, %s24_s13  }
   0xb   : > { %p560_p5 = por %p32_p2, %p31_p0  ;;  %p564_p6 = por %p38_p4, %p37_p3 }
   0xc   : > { %p61_p7 = scmp.eq.s32.totalorder %s542_s10, 7  ;;  %p67_p8 = scmp.eq.s32.totalorder %s323_s11, 7 }
   0xd   : > { %p351_p9 = scmp.lt.s32.totalorder %s494_s9, 8  ;;  %s87_s20 = sand.u32 1, %s490_s8  }
   0xe   : > { %p570_p10 = por %p61_p7, %p31_p0  ;;  %p574_p11 = por %p67_p8, %p37_p3 }
   0xf   : > { %s337_s21 = sshll.u32 %s494_s9, 5  ;;  %s326_s22 = sshll.u32 %s87_s20, 1 }
  0x10   : > { %s831_s18 = scalar_select %p570_p10, 1, 0 }
  0x11   : > { %s832_s19 = scalar_select %p574_p11, 1, 0 }
  0x12   : > { %s583_s25 = scalar_lea.hbm %s824_s0, %s337_s21  ;;  %s91_s26 = scalar_lea.vmem [#allocation2], %s326_s22 }
  0x13   : > { %s99_s27 = sshll.u32 %s91_s26, 4  ;;  %p587_p12 = pnand %p351_p9, %p560_p5  ;;  %s591_s27 = int_to_ptr.vmem [resolvable:$true] %s99_s27 }
  0x14   : > { %s88_s29 = scalar_lea.sflag [#allocation3], %s87_s20  ;;  %s398_s30 = scalar_lea.hbm %s583_s25, 32 }
  0x15   : > { %p399_p1 = scmp.ne.s32.totalorder %s583_s25, %s398_s30  ;;  %p400_p2 = pneg %p587_p12 }
  0x16   : > { %s403_s4 = scalar_lea.hbm %s824_s0, 256  ;;  %p404_p5 = scmp.lt.u32.totalorder %s583_s25, %s824_s0 }
  0x17   : > { %p401_p3 = pnand %p400_p2, %p399_p1  ;;  %p405_p7 = scmp.lt.u32.totalorder %s403_s4, %s398_s30 }
  0x18   : > { %p407_p9 = scmp.lt.u32.totalorder %s398_s30, %s583_s25 }
  0x19   : > { %p402_p4 = pneg %p401_p3  ;;  %p406_p8 = por %p405_p7, %p404_p5 }
  0x1b   : > { %p408_p13 = por %p407_p9, %p406_p8 }
  0x1d   : > { %p409_p0 = pnand %p408_p13, %p402_p4 }
  0x1f   : > { %412 = shalt.err (!%p409_p0)
}
  0x20   : > { %s413_s13 = scalar_lea.vmem %s591_s27, 32  ;;  %s496_s14 = smov [#allocation2]  }
  0x21   : > { %p414_p1 = scmp.ne.s32.totalorder %s591_s27, %s413_s13  ;;  %s418_s16 = sshll.u32 %s496_s14, 4  ;;  %s419_s16 = int_to_ptr.vmem [resolvable:$false] %s418_s16 }
  0x22   : > { %s420_s20 = scalar_lea.vmem %s419_s16, 64  ;;  %p421_p10 = scmp.lt.s32.totalorder %s591_s27, %s419_s16 }
  0x23   : > { %p416_p3 = pnand %p414_p1, %p400_p2  ;;  %p422_p5 = scmp.lt.s32.totalorder %s420_s20, %s413_s13 }
  0x25   : > { %p417_p11 = pneg %p416_p3  ;;  %p423_p7 = por %p422_p5, %p421_p10 }
  0x27   : > { %p424_p8 = pnand %p423_p7, %p417_p11 }
  0x29   : > { %427 = shalt.err (!%p424_p8)
}
  0x2a   : > { %346 = dma.hbm_to_vmem [thread:$0]  (!%p587_p12), %s583_s25, 32, %s591_s27, %s88_s29  }
  0x2b   : > { %p834_p13 = scmp.lt.s32.totalorder %s494_s9, 9  ;;  %p835_p0 = scmp.ge.s32.totalorder %s494_s9, 1 }
  0x2d   : > { %p105_p2 = pnand %p835_p0, %p834_p13 }
  0x2e   : > { %s625_s21 = sand.u32 (!%p105_p2), 1, %s486_s7  }
  0x2f   : > { %108 = sbr.rel (%p105_p2) target bundleno = 206 (0xce), region = 24  ;;  %s330_s22 = sshll.u32 (!%p105_p2), %s625_s21, 1 }
  0x30   : > { %s111_s23 = scalar_lea.sflag (!%p105_p2), [#allocation3], %s625_s21  ;;  %s629_s24 = scalar_lea.vmem (!%p105_p2), [#allocation2], %s330_s22 }
  0x36   : > { %473 = dma.done.wait (%p564_p6), %s111_s23, 32  }
  0x37   : > { %475 = vsyncadd (%p564_p6), %s111_s23, 4294967264  ;;  %v133_v0 = vlaneseq  ;;  %v151_v1 = vld [vmem:[%s629_s24] sm:$0x1]  ;;  %s638_s25 = scalar_lea.vmem [#allocation5], %s330_s22  ;;  %v497_v3 = vmov 0.0   ;;  %s498_s17 = smov 6  }
  0x38   : > { %v142_v2 = vld [vmem:[%s629_s24] sm:$0x1]  ;;  %153 = vrot.lane.b32.xlu1 %v151_v1, %s498_s17  ;;  %s499_s26 = smov 3   ;;  %s500_s27 = smov 9   ;;  %v220_v10 = vld [vmem:[%s629_s24 + $0x1] sm:$0x1] }
  0x39   : > { %vm135_vm0 = vcmp.lt.s32.totalorder %v133_v0, 256  ;;  %144 = vrot.lane.b32.xlu0 %v142_v2, %s499_s26  ;;  %v160_v4 = vld [vmem:[%s629_s24] sm:$0x1]  ;;  %vm644_vm1 = vcmp.lt.s32.totalorder %v133_v0, 13  ;;  %s501_s28 = smov 27   ;;  %s502_s29 = smov 12  }
  0x3a   : > { %137 = vst.msk [vmem:[%s638_s25] sm:$0x3] %vm135_vm0, %v497_v3  ;;  %v211_v5 = vld [vmem:[%s629_s24] sm:$0x3]  ;;  %s503_s30 = smov 24   ;;  %s504_s2 = smov 30  }
  0x3b   : > { %v138_v7 = vld [vmem:[%s629_s24] sm:$0x1]  ;;  %s505_s3 = smov 15   ;;  %v226_v12 = vld [vmem:[%s629_s24 + $0x1] sm:$0x1]  ;;  %s506_s4 = smov 33  }
  0x3c   : > { %162 = vrot.lane.b32.xlu1 %v160_v4, %s500_s27  ;;  %141 = vst.msk [vmem:[%s638_s25] sm:$0x1] %vm644_vm1, %v138_v7  ;;  %v169_v8 = vld [vmem:[%s629_s24] sm:$0x1]  ;;  %s507_s5 = smov 18   ;;  %s508_s11 = smov 36  }
  0x3d   : > { %213 = vrot.lane.b32.xlu0 %v211_v5, %s501_s28  ;;  %v205_v9 = vld [vmem:[%s629_s24] sm:$0x1]  ;;  %v232_v14 = vld [vmem:[%s629_s24 + $0x1] sm:$0x1]  ;;  %s509_s13 = smov 21   ;;  %vm661_vm2 = vcmp.ge.s32.totalorder %v133_v0, 16 }
  0x3e   : > { %v178_v11 = vld [vmem:[%s629_s24] sm:$0x1]  ;;  %vm666_vm3 = vcmp.lt.s32.totalorder %v133_v0, 29  ;;  %vm671_vm4 = vcmp.ge.s32.totalorder %v133_v0, 32  ;;  %vm676_vm5 = vcmp.lt.s32.totalorder %v133_v0, 45  ;;  %vm689_vm8 = vcmp.ge.s32.totalorder %v133_v0, 48 }
  0x3f   : > { %v187_v13 = vld [vmem:[%s629_s24] sm:$0x1]  ;;  %vm149_vm6 = vmand %vm661_vm2, %vm666_vm3  ;;  %vm694_vm9 = vcmp.lt.s32.totalorder %v133_v0, 61  ;;  %vm715_vm11 = vcmp.ge.s32.totalorder %v133_v0, 64  ;;  %vm720_vm12 = vcmp.lt.s32.totalorder %v133_v0, 77  ;;  %vm216_vm13 = vcmask 220160  }
  0x40   : > { %171 = vrot.lane.b32.xlu1 %v169_v8, %s502_s29  ;;  %v196_v15 = vld [vmem:[%s629_s24] sm:$0x1]  ;;  %vm828_vm7 = vmand %vm671_vm4, %vm676_vm5  ;;  %vm183_vm15 = vcmp.ge.s32.totalorder %v133_v0, 80  ;;  %vm184_vm0 = vcmp.lt.s32.totalorder %v133_v0, 93  ;;  %vm201_vm3 = vcmp.ge.s32.totalorder %v133_v0, 112  ;;  %s338_s14 = sshll.u32 %s542_s10, 5 }
  0x41   : > { %207 = vrot.lane.b32.xlu0 %v205_v9, %s503_s30  ;;  %vm827_vm10 = vmand %vm689_vm8, %vm694_vm9  ;;  %s253_s16 = sshll.u32 %s638_s25, 4  ;;  %s774_s23 = scalar_lea.hbm %s825_s1, %s338_s14  ;;  %s776_s16 = int_to_ptr.vmem [resolvable:$true] %s253_s16 }
  0x42   : > { %vm176_vm14 = vmand %vm715_vm11, %vm720_vm12  ;;  %s239_s10 = scalar_lea.sflag [#allocation4], %s625_s21  ;;  %s428_s24 = scalar_lea.vmem %s776_s16, 32 }
  0x43   : > { %p429_p6 = scmp.ne.s32.totalorder %s776_s16, %s428_s24  ;;  %p856_p10 = scmp.ne.s32.totalorder %s831_s18, 0 }
  0x44   : > { %222 = vrot.lane.b32.xlu1 %v220_v10, %s504_s2  ;;  %s510_s17 = smov [#allocation5]  }
  0x45   : > { %180 = vrot.lane.b32.xlu0 %v178_v11, %s505_s3  ;;  %p430_p11 = pnand %p429_p6, %p856_p10  ;;  %s432_s26 = sshll.u32 %s510_s17, 4  ;;  %s433_s26 = int_to_ptr.vmem [resolvable:$false] %s432_s26 }
  0x46   : > { %s434_s27 = scalar_lea.vmem %s433_s26, 64  ;;  %p435_p4 = scmp.lt.s32.totalorder %s776_s16, %s433_s26 }
  0x47   : > { %p431_p12 = pneg %p430_p11  ;;  %p436_p9 = scmp.lt.s32.totalorder %s434_s27, %s428_s24 }
  0x48   : > { %228 = vrot.lane.b32.xlu1 %v226_v12, %s506_s4 }
  0x49   : > { %189 = vrot.lane.b32.xlu0 %v187_v13, %s507_s5  ;;  %p437_p1 = por %p436_p9, %p435_p4 }
  0x4b   : > { %p438_p3 = pnand %p437_p1, %p431_p12 }
  0x4c   : > { %234 = vrot.lane.b32.xlu1 %v232_v14, %s508_s11 }
  0x4d   : > { %198 = vrot.lane.b32.xlu0 %v196_v15, %s509_s13 }
  0xaa   : > { %v154_v22 = vpop.permute.xlu1 %153 }
  0xab   : > { %v145_v23 = vpop.permute.xlu0 %144 }
  0xac   : > { %150 = vst.msk [vmem:[%s638_s25] sm:$0x1] %vm149_vm6, %v145_v23 }
  0xad   : > { %159 = vst.msk [vmem:[%s638_s25] sm:$0x1] %vm828_vm7, %v154_v22  ;;  %vm193_vm7 = vcmp.lt.s32.totalorder %v133_v0, 109 }
  0xae   : > { %v163_v26 = vpop.permute.xlu1 %162 }
  0xaf   : > { %v214_v27 = vpop.permute.xlu0 %213  ;;  %168 = vst.msk [vmem:[%s638_s25] sm:$0x1] %vm827_vm10, %v163_v26  ;;  %vm192_vm10 = vcmp.ge.s32.totalorder %v133_v0, 96 }
  0xb0   : > { %v215_v28 = vrot.slane %v214_v27, 1  ;;  %vm194_vm2 = vmand %vm192_vm10, %vm193_vm7 }
  0xb2   : > { %v172_v29 = vpop.permute.xlu1 %171  ;;  %v217_v31 = vsel %vm216_vm13, %v214_v27, %v215_v28  ;;  %vm185_vm13 = vmand %vm183_vm15, %vm184_vm0 }
  0xb3   : > { %v208_v30 = vpop.permute.xlu0 %207  ;;  %177 = vst.msk [vmem:[%s638_s25] sm:$0x1] %vm176_vm14, %v172_v29 }
  0xb4   : > { %210 = vst.msk [vmem:[%s638_s25 + $0x1] sm:$0x1] %vm644_vm1, %v208_v30  ;;  %vm854_vm1 = vmand %vm671_vm4, %vm676_vm5 }
  0xb5   : > { %219 = vst.msk [vmem:[%s638_s25 + $0x1] sm:$0x1] %vm149_vm6, %v217_v31  ;;  %vm202_vm6 = vcmp.lt.s32.totalorder %v133_v0, 125  ;;  %vm855_vm4 = vmand %vm689_vm8, %vm694_vm9 }
  0xb6   : > { %v223_v32 = vpop.permute.xlu1 %222  ;;  %vm203_vm5 = vmand %vm201_vm3, %vm202_vm6 }
  0xb7   : > { %v181_v33 = vpop.permute.xlu0 %180  ;;  %225 = vst.msk [vmem:[%s638_s25 + $0x1] sm:$0x1] %vm854_vm1, %v223_v32 }
  0xb8   : > { %186 = vst.msk [vmem:[%s638_s25] sm:$0x1] %vm185_vm13, %v181_v33 }
  0xba   : > { %v229_v34 = vpop.permute.xlu1 %228 }
  0xbb   : > { %v190_v35 = vpop.permute.xlu0 %189  ;;  %231 = vst.msk [vmem:[%s638_s25 + $0x1] sm:$0x1] %vm855_vm4, %v229_v34 }
  0xbc   : > { %195 = vst.msk [vmem:[%s638_s25] sm:$0x1] %vm194_vm2, %v190_v35 }
  0xbe   : > { %v235_v36 = vpop.permute.xlu1 %234 }
  0xbf   : > { %v199_v37 = vpop.permute.xlu0 %198  ;;  %237 = vst.msk [vmem:[%s638_s25 + $0x1] sm:$0x1] %vm176_vm14, %v235_v36 }
  0xc0   : > { %204 = vst.msk [vmem:[%s638_s25] sm:$0x1] %vm203_vm5, %v199_v37 }
  0xc1   : > { %441 = shalt.err (!%p438_p3)
}
  0xc2   : > { %s442_s21 = scalar_lea.hbm %s774_s23, 32  ;;  %s446_s29 = scalar_lea.hbm %s825_s1, 256 }
  0xc3   : > { %p443_p5 = scmp.ne.s32.totalorder %s774_s23, %s442_s21  ;;  %p447_p13 = scmp.lt.u32.totalorder %s774_s23, %s825_s1 }
  0xc4   : > { %p448_p0 = scmp.lt.u32.totalorder %s446_s29, %s442_s21  ;;  %p450_p6 = scmp.lt.u32.totalorder %s442_s21, %s774_s23 }
  0xc5   : > { %p444_p7 = pnand %p443_p5, %p856_p10 }
  0xc6   : > { %p449_p2 = por %p448_p0, %p447_p13 }
  0xc7   : > { %p445_p8 = pneg %p444_p7 }
  0xc8   : > { %p451_p11 = por %p450_p6, %p449_p2 }
  0xca   : > { %p452_p12 = pnand %p451_p11, %p445_p8 }
  0xcc   : > { %455 = shalt.err (!%p452_p12)
}
  0xcd   : > { %341 = dma.vmem_to_hbm [thread:$0]  (%p856_p10), %s776_s16, 32, %s774_s23, %s239_s10  }
  0xce PF: > { %p352_p4 = scmp.ge.s32.totalorder %s494_s9, 2  ;;  %s265_s3 = sand.u32 1, %s482_s6  }
  0xcf   : > { %p857_p9 = scmp.ne.s32.totalorder %s832_s19, 0  ;;  %s266_s4 = scalar_lea.sflag [#allocation4], %s265_s3 }
  0xd1   : > { %p348_p1 = pnand %p352_p4, %p857_p9 }
  0xd3   : > { %477 = dma.done.wait (!%p348_p1), %s266_s4, 32  }
  0xd4   : > { %479 = vsyncadd (!%p348_p1), %s266_s4, 4294967264  ;;  %p14_p3 = scmp.ge.s32.totalorder %s546_s12, 10   ;;  %s858_s6 = smov %s486_s7 }
  0xd5   : > { %s859_s7 = smov %s490_s8  ;;  %s860_s8 = smov %s558_s15 }
  0xd6   : > { %s861_s9 = smov %s546_s12  ;;  %16 = sbr.rel (!%p14_p3) target bundleno = 5 (0x5), region = 69 }
  0xdd   :  { %271 = vsyncpa [#allocation3], 1 }
  0xde   :  { %273 = vsyncpa [#allocation3 + $0x1], 1 }
  0xdf   :  { %274 = vsyncpa [#allocation4], 1 }
  0xe0   :  { %276 = vsyncpa [#allocation4 + $0x1], 1 }

</bundles_post_ra>
